<compile_context>
chip_gen: v7x
topology: tpu7x:2x2x1
jax: 0.10.0
libtpu: 0.0.40
codegen_flags: <defaults>
</compile_context>

<pallas_src>
import functools

import jax
import jax.numpy as jnp
from jax.experimental import pallas as pl
from jax.experimental.pallas import tpu as pltpu


def bahdanau_kernel(enc_ref, s2_ref, we_ref, v_ref, out_ref):
    # enc_ref: (TB, T, E)   s2_ref: (TB, H)  (= dec @ Wd^T + bd + be)
    # we_ref:  (E, H)       v_ref:  (1, H)   out_ref: (TB, E)
    TB, T, E = enc_ref.shape
    H = we_ref.shape[1]

    enc = enc_ref[...]                                        # (TB, T, E), f32

    # s1 = W_encoder(encoder_out): one big MXU matmul over the flattened batch tile.
    enc2d = enc.reshape(TB * T, E)
    s1 = jnp.dot(enc2d, we_ref[...],
                 preferred_element_type=jnp.float32)          # (TB*T, H)

    # score = tanh(s1 + s2) ; s2 (with both biases folded in) broadcast per row.
    score = jnp.tanh(s1.reshape(TB, T, H) + s2_ref[...].reshape(TB, 1, H))

    # V contraction -> logits (TB, T): batch on sublanes, T on lanes.
    logits = jnp.sum(score * v_ref[...].reshape(1, 1, H), axis=-1)   # (TB, T)

    # softmax over T (lane axis); denominator reciprocal on the EUP.
    m = jnp.max(logits, axis=-1, keepdims=True)
    e = jnp.exp(logits - m)
    denom = jnp.sum(e, axis=-1, keepdims=True)
    attn = e * pl.reciprocal(denom, approx=True)              # (TB, T)

    # context = sum_T(attn * encoder_out) as a batched MXU contraction.
    ctx = jnp.einsum('bqt,bte->bqe', attn.reshape(TB, 1, T), enc,
                     preferred_element_type=jnp.float32)      # (TB, 1, E)
    out_ref[...] = ctx.reshape(TB, E).astype(out_ref.dtype)


def _round_up(x, m):
    return ((x + m - 1) // m) * m


def _choose_tb(B, T, E, itemsize=4, enc_tile_budget_bytes=8 << 20):
    """Batch tile: sublane-dense (>=8), enc tile (double-buffered) within budget,
    and keep >= 2 grid blocks when B allows it (v7x has 2 TensorCores)."""
    tb = 8
    while True:
        nxt = tb * 2
        if nxt > _round_up(B, 8):
            break
        if 2 * nxt * T * E * itemsize > enc_tile_budget_bytes:
            break
        if pl.cdiv(B, nxt) < 2 <= pl.cdiv(B, tb):
            break
        tb = nxt
    return tb


@functools.partial(jax.jit, static_argnames=())
def bahdanau_attention(encoder_out, decoder_out, we, be, wd, bd, v, bv):
    """encoder_out: (B, T, E); decoder_out: (1, B, D) (seq-first, as in PyTorch).

    Weights in PyTorch Linear layout: we (H, E), wd (H, D), v (1, H), bv (1,).
    bv is a constant shift of the logits (softmax-invariant) and is dropped.
    """
    del bv  # softmax(logits + bv) == softmax(logits)

    B, T, E = encoder_out.shape
    D = decoder_out.shape[-1]
    H = we.shape[0]

    # Hoist the tiny decoder projection (M=1 per batch element) out of the
    # kernel, folding both biases in: s2 = dec @ Wd^T + bd + be.
    dec = jnp.transpose(decoder_out, (1, 0, 2)).reshape(B, D)          # (B, D)
    s2 = dec @ wd.T + (bd + be)[None, :]                               # (B, H)

    we_t = we.T                                                        # (E, H)
    v2 = v.reshape(1, H)

    TB = _choose_tb(B, T, E)
    B_pad = pl.cdiv(B, TB) * TB
    if B_pad != B:
        enc_p = jnp.pad(encoder_out, ((0, B_pad - B), (0, 0), (0, 0)))
        s2_p = jnp.pad(s2, ((0, B_pad - B), (0, 0)))
    else:
        enc_p, s2_p = encoder_out, s2

    grid_spec = pltpu.PrefetchScalarGridSpec(
        num_scalar_prefetch=0,
        grid=(B_pad // TB,),
        in_specs=[
            pl.BlockSpec((TB, T, E), lambda b: (b, 0, 0)),   # encoder tile
            pl.BlockSpec((TB, H), lambda b: (b, 0)),         # s2 (dec proj + biases)
            pl.BlockSpec((E, H), lambda b: (0, 0)),          # We^T (resident)
            pl.BlockSpec((1, H), lambda b: (0, 0)),          # V   (resident)
        ],
        out_specs=pl.BlockSpec((TB, E), lambda b: (b, 0)),   # sublane/lane-dense
    )

    out = pl.pallas_call(
        bahdanau_kernel,
        out_shape=jax.ShapeDtypeStruct((B_pad, E), encoder_out.dtype),
        grid_spec=grid_spec,
        compiler_params=pltpu.CompilerParams(
            dimension_semantics=("parallel",),
            vmem_limit_bytes=32 * 1024 * 1024,
        ),
    )(enc_p, s2_p, we_t, v2)

    return out[:B]


def reference(encoder_out, decoder_out, we, be, wd, bd, v, bv):
    dec = jnp.transpose(decoder_out, (1, 0, 2))
    s1 = encoder_out @ we.T + be
    s2 = dec @ wd.T + bd
    score = jnp.tanh(s1 + s2) @ v.T + bv
    attn = jax.nn.softmax(score, axis=1)
    return jnp.sum(attn * encoder_out, axis=1)


if __name__ == "__main__":
    B, T = 2, 8
    len_encoder, len_decoder, H = 32, 32, 512

    key = jax.random.PRNGKey(0)
    k = jax.random.split(key, 8)

    # deterministic parameter init (PyTorch Linear-style uniform bounds)
    def u(kk, shape, fan_in):
        bound = 1.0 / jnp.sqrt(fan_in)
        return jax.random.uniform(kk, shape, jnp.float32, -bound, bound)

    we = u(k[0], (H, len_encoder), len_encoder)
    be = u(k[1], (H,), len_encoder)
    wd = u(k[2], (H, len_decoder), len_decoder)
    bd = u(k[3], (H,), len_decoder)
    v = u(k[4], (1, H), H)
    bv = u(k[5], (1,), H)

    encoder_out = jax.random.normal(k[6], (B, T, len_encoder), jnp.float32)
    decoder_out = jax.random.normal(k[7], (1, B, len_decoder), jnp.float32)

    out = bahdanau_attention(encoder_out, decoder_out, we, be, wd, bd, v, bv)
    out = jax.block_until_ready(out)

    ref = reference(encoder_out, decoder_out, we, be, wd, bd, v, bv)
    assert out.shape == (B, len_encoder)
    # tolerance accounts for the EUP approximate reciprocal in the softmax denom
    assert jnp.allclose(out, ref, atol=1e-3, rtol=1e-3)

    print("KERNEL_OK")
</pallas_src>

<mosaic_0001>
module attributes {stable_mosaic.version = 11 : i64} {
  func.func @bahdanau_kernel(%arg0: i32, %arg1: memref<8x8x32xf32, #tpu.memory_space<vmem>>, %arg2: memref<8x512xf32, #tpu.memory_space<vmem>>, %arg3: memref<32x512xf32, #tpu.memory_space<vmem>>, %arg4: memref<1x512xf32, #tpu.memory_space<vmem>>, %arg5: memref<8x32xf32, #tpu.memory_space<vmem>>) attributes {dimension_semantics = [#tpu.dimension_semantics<parallel>], iteration_bounds = array<i64: 1>, scalar_prefetch = 0 : i64, scratch_operands = 0 : i64, tpu.core_type = #tpu.core_type<tc>, window_params = [{transform_indices = @transform_0, window_bounds = array<i64: 8, 8, 32>}, {transform_indices = @transform_1, window_bounds = array<i64: 8, 512>}, {pipeline_mode = #tpu.pipeline_mode<synchronous>, transform_indices = @transform_2, window_bounds = array<i64: 32, 512>}, {pipeline_mode = #tpu.pipeline_mode<synchronous>, transform_indices = @transform_3, window_bounds = array<i64: 1, 512>}, {transform_indices = @transform_4, window_bounds = array<i64: 8, 32>}]} {
    %c0 = arith.constant 0 : index
    %c0_0 = arith.constant 0 : index
    %c0_1 = arith.constant 0 : index
    %0 = vector.load %arg1[%c0, %c0_0, %c0_1] : memref<8x8x32xf32, #tpu.memory_space<vmem>>, vector<8x8x32xf32>
    %1 = vector.shape_cast %0 : vector<8x8x32xf32> to vector<64x32xf32>
    %c0_2 = arith.constant 0 : index
    %c0_3 = arith.constant 0 : index
    %2 = vector.load %arg3[%c0_2, %c0_3] : memref<32x512xf32, #tpu.memory_space<vmem>>, vector<32x512xf32>
    %cst = arith.constant dense<0.000000e+00> : vector<64x512xf32>
    %3 = tpu.matmul %1, %2, %cst {dimension_numbers = #tpu.dot_dimension_numbers<[1], [0], [0], [1], [0, 0, 1, 1], [], []>} : vector<64x32xf32>, vector<32x512xf32>, vector<64x512xf32> -> vector<64x512xf32>
    %4 = vector.shape_cast %3 : vector<64x512xf32> to vector<8x8x512xf32>
    %c0_4 = arith.constant 0 : index
    %c0_5 = arith.constant 0 : index
    %5 = vector.load %arg2[%c0_4, %c0_5] : memref<8x512xf32, #tpu.memory_space<vmem>>, vector<8x512xf32>
    %6 = vector.shape_cast %5 : vector<8x512xf32> to vector<8x1x512xf32>
    %7 = vector.broadcast %6 : vector<8x1x512xf32> to vector<8x8x512xf32>
    %8 = arith.addf %4, %7 : vector<8x8x512xf32>
    %9 = math.tanh %8 : vector<8x8x512xf32>
    %c0_6 = arith.constant 0 : index
    %c0_7 = arith.constant 0 : index
    %10 = vector.load %arg4[%c0_6, %c0_7] : memref<1x512xf32, #tpu.memory_space<vmem>>, vector<1x512xf32>
    %11 = vector.shape_cast %10 : vector<1x512xf32> to vector<1x1x512xf32>
    %12 = vector.broadcast %11 : vector<1x1x512xf32> to vector<8x8x512xf32>
    %13 = arith.mulf %9, %12 : vector<8x8x512xf32>
    %cst_8 = arith.constant dense<0.000000e+00> : vector<8x8xf32>
    %14 = vector.multi_reduction <add>, %13, %cst_8 [2] : vector<8x8x512xf32> to vector<8x8xf32>
    %cst_9 = arith.constant dense<0xFF800000> : vector<8xf32>
    %15 = vector.multi_reduction <maximumf>, %14, %cst_9 [1] : vector<8x8xf32> to vector<8xf32>
    %16 = vector.shape_cast %15 : vector<8xf32> to vector<8x1xf32>
    %17 = vector.broadcast %16 : vector<8x1xf32> to vector<8x8xf32>
    %18 = arith.subf %14, %17 : vector<8x8xf32>
    %19 = math.exp %18 : vector<8x8xf32>
    %cst_10 = arith.constant dense<0.000000e+00> : vector<8xf32>
    %20 = vector.multi_reduction <add>, %19, %cst_10 [1] : vector<8x8xf32> to vector<8xf32>
    %21 = vector.shape_cast %20 : vector<8xf32> to vector<8x1xf32>
    %22 = tpu.reciprocal %21 {approx = true} : vector<8x1xf32> -> vector<8x1xf32>
    %23 = vector.broadcast %22 : vector<8x1xf32> to vector<8x8xf32>
    %24 = arith.mulf %19, %23 : vector<8x8xf32>
    %25 = vector.shape_cast %24 : vector<8x8xf32> to vector<8x1x8xf32>
    "tpu.trace_start"() <{level = 10 : i32, message = "bqt,bte->bqe"}> : () -> ()
    %cst_11 = arith.constant dense<0.000000e+00> : vector<8x1x32xf32>
    %26 = tpu.matmul %25, %0, %cst_11 {dimension_numbers = #tpu.dot_dimension_numbers<[2], [1], [1], [2], [0, 0, 0, 1, 1, 2], [0], [0]>} : vector<8x1x8xf32>, vector<8x8x32xf32>, vector<8x1x32xf32> -> vector<8x1x32xf32>
    "tpu.trace_stop"() : () -> ()
    %27 = vector.shape_cast %26 : vector<8x1x32xf32> to vector<8x32xf32>
    %c0_12 = arith.constant 0 : index
    %c0_13 = arith.constant 0 : index
    %28 = vector.load %arg5[%c0_12, %c0_13] : memref<8x32xf32, #tpu.memory_space<vmem>>, vector<8x32xf32>
    tpu.vector_store %arg5[%c0_12, %c0_13], %27 {strides = array<i32>} : memref<8x32xf32, #tpu.memory_space<vmem>>, vector<8x32xf32>,
    return
  }
  func.func @transform_0(%arg0: i32) -> (i32, i32, i32) {
    %c0_i32 = arith.constant 0 : i32
    %c0_i32_0 = arith.constant 0 : i32
    %c0_i32_1 = arith.constant 0 : i32
    return %arg0, %c0_i32, %c0_i32_0 : i32, i32, i32
  }
  func.func @transform_1(%arg0: i32) -> (i32, i32) {
    %c0_i32 = arith.constant 0 : i32
    %c0_i32_0 = arith.constant 0 : i32
    return %arg0, %c0_i32 : i32, i32
  }
  func.func @transform_2(%arg0: i32) -> (i32, i32) {
    %c0_i32 = arith.constant 0 : i32
    %c0_i32_0 = arith.constant 0 : i32
    %c0_i32_1 = arith.constant 0 : i32
    return %c0_i32, %c0_i32_0 : i32, i32
  }
  func.func @transform_3(%arg0: i32) -> (i32, i32) {
    %c0_i32 = arith.constant 0 : i32
    %c0_i32_0 = arith.constant 0 : i32
    %c0_i32_1 = arith.constant 0 : i32
    return %c0_i32, %c0_i32_0 : i32, i32
  }
  func.func @transform_4(%arg0: i32) -> (i32, i32) {
    %c0_i32 = arith.constant 0 : i32
    %c0_i32_0 = arith.constant 0 : i32
    return %arg0, %c0_i32 : i32, i32
  }
}

</mosaic_0001>

<bundles_post_ra>
// kernel: bahdanau_attention.1
= control target key start
LH: loop header
LB: loop body
LE: loop exit
PB: predicated region body
PF: predicated region fallthrough
CT: control target
= control target key end

     0   :  { %v1795_v3 = vmov 0.0   ;;  %vm41_vm0 = vcmask 261120   ;;  %v1796_v33 = vmov 1966171168   ;;  %v307_v35 = vlaneseq  ;;  %s2241_s2 = inlined_call_operand.vmem [shape: f32[32,512], index: 2, kind: input, shape index: {}]   ;;  %s2242_s0 = inlined_call_operand.vmem [shape: f32[8,8,32], index: 0, kind: input, shape index: {}]   ;;  %s2243_s1 = inlined_call_operand.vmem [shape: f32[8,512], index: 1, kind: input, shape index: {}]   ;;  %s2244_s3 = inlined_call_operand.vmem [shape: f32[1,512], index: 3, kind: input, shape index: {}]   ;;  %s2245_s4 = inlined_call_operand.vmem [shape: f32[8,32], index: 4, kind: output, shape index: {}]  }
   0x1   :  { %v26_v0 = vld [vmem:[%s2241_s2 + $0x8] sm:$0xff]  ;;  %v25_v2 = vld [vmem:[%s2241_s2] sm:$0xff]  ;;  %130 = vmatprep.mubr.f32.mxu0 %v1795_v3  ;;  %243 = vmatprep.mubr.f32.mxu1 %v1795_v3  ;;  %v28_v6 = vld [vmem:[%s2241_s2 + $0x18] sm:$0xff]  ;;  %v305_v34 = vunpack.c.l.s4 %v1796_v33  ;;  %vm728_vm1 = vcmask 1041409   ;;  %vm730_vm2 = vcmask 1042434   ;;  %vm732_vm3 = vcmask 1043459  }
   0x2   :  { %v30_v1 = vld [vmem:[%s2241_s2 + $0x28] sm:$0xff]  ;;  %v29_v5 = vld [vmem:[%s2241_s2 + $0x20] sm:$0xff]  ;;  %v32_v7 = vld [vmem:[%s2241_s2 + $0x38] sm:$0xff]  ;;  %v1957_v37 = vshrl.u32 %v307_v35, 7  ;;  %vm734_vm4 = vcmask 1044484   ;;  %vm736_vm5 = vcmask 1045509  }
   0x3   :  { %v1685_v4 = vpack.c.bf16 %v30_v1, %v26_v0  ;;  %v1687_v8 = vpack.c.bf16 %v29_v5, %v25_v2  ;;  %v1693_v9 = vpack.c.bf16 %v32_v7, %v28_v6  ;;  %v27_v10 = vld [vmem:[%s2241_s2 + $0x10] sm:$0xff]  ;;  %v34_v12 = vld [vmem:[%s2241_s2 + $0x48] sm:$0xff]  ;;  %v33_v15 = vld [vmem:[%s2241_s2 + $0x40] sm:$0xff]  ;;  %v306_v36 = vunpack.c.0.s8 %v305_v34 }
   0x4   :  { %v31_v11 = vld [vmem:[%s2241_s2 + $0x30] sm:$0xff]  ;;  %v38_v14 = vld [vmem:[%s2241_s2 + $0x68] sm:$0xff]  ;;  %v37_v16 = vld [vmem:[%s2241_s2 + $0x60] sm:$0xff]  ;;  %v1973_v48 = vsub.s32 0, %v1957_v37  ;;  %v1976_v49 = vsub.s32 1, %v1957_v37  ;;  %v1979_v50 = vsub.s32 2, %v1957_v37 }
   0x5   :  { %1686 = vmatprep.subr.bf16.mxu0 %v1685_v4  ;;  %v1695_v13 = vpack.c.bf16 %v31_v11, %v27_v10  ;;  %1694 = vmatprep.subr.bf16.mxu1 %v1693_v9  ;;  %v1689_v17 = vpack.c.bf16 %v38_v14, %v34_v12  ;;  %v1691_v18 = vpack.c.bf16 %v37_v16, %v33_v15  ;;  %v36_v19 = vld [vmem:[%s2241_s2 + $0x58] sm:$0xff]  ;;  %v35_v21 = vld [vmem:[%s2241_s2 + $0x50] sm:$0xff]  ;;  %v17_v25 = vld [vmem:[%s2242_s0] sm:$0xff]  ;;  %v1982_v51 = vsub.s32 3, %v1957_v37 }
   0x6   :  { %1688 = vmatpush1.bf16.msra.mxu0 %v1687_v8  ;;  %v40_v20 = vld [vmem:[%s2241_s2 + $0x78] sm:$0xff]  ;;  %v39_v23 = vld [vmem:[%s2241_s2 + $0x70] sm:$0xff]  ;;  %v18_v26 = vld [vmem:[%s2242_s0 + $0x8] sm:$0xff]  ;;  %v309_v40 = vsub.s32 %v306_v36, %v1957_v37  ;;  %vm738_vm6 = vcmask 1046534   ;;  %vm740_vm7 = vcmask 1047559   ;;  %vm743_vm8 = vcmask 64512  }
   0x7   :  { %1696 = vmatpush1.bf16.msra.mxu1 %v1695_v13  ;;  %v1697_v22 = vpack.c.bf16 %v40_v20, %v36_v19  ;;  %1690 = vmatprep.subr.bf16.mxu0 %v1689_v17  ;;  %v1699_v24 = vpack.c.bf16 %v39_v23, %v35_v21  ;;  %v1894_v27 = vld [vmem:[%s2242_s0 + $0x10] sm:$0xff]  ;;  %v1905_v28 = vld [vmem:[%s2242_s0 + $0x18] sm:$0xff]  ;;  %v1916_v29 = vld [vmem:[%s2242_s0 + $0x20] sm:$0xff]  ;;  %vm1798_vm9 = vmmov 0  }
   0x8   :  { %v1927_v30 = vld [vmem:[%s2242_s0 + $0x28] sm:$0xff]  ;;  %v1938_v31 = vld [vmem:[%s2242_s0 + $0x30] sm:$0xff]  ;;  %v1949_v32 = vld [vmem:[%s2242_s0 + $0x38] sm:$0xff] }
   0x9   :  { %1698 = vmatprep.subr.bf16.mxu1 %v1697_v22  ;;  %v1707_v38 = vld [vmem:[%s2243_s1] ss:$8 sps:$4 sm:$0xff]   ;;  %v1709_v39 = vld [vmem:[%s2243_s1 + $0x10] ss:$8 sps:$4 sm:$0xff]   ;;  %v1711_v44 = vld [vmem:[%s2243_s1 + $0x4] ss:$8 sps:$4 sm:$0xff]  }
   0xa   :  { %1692 = vmatpush1.bf16.msra.mxu0 %v1691_v18  ;;  %v310_v41 = vrot.slane %v1707_v38, %v309_v40  ;;  %v324_v42 = vrot.slane %v1709_v39, %v309_v40  ;;  %v1712_v45 = vld [vmem:[%s2243_s1 + $0x14] ss:$8 sps:$4 sm:$0xff]   ;;  %v317_v52 = vrot.slane %v1711_v44, %v309_v40  ;;  %v592_v9 = vld [vmem:[%s2244_s3] sm:$0xf] }
   0xb   :  { %1700 = vmatpush1.bf16.msra.mxu1 %v1699_v24  ;;  %1645 = vmatprep.subr.mxu0 %v1795_v3  ;;  %v331_v53 = vrot.slane %v1712_v45, %v309_v40  ;;  %v2014_v21 = vrot.slane %v592_v9, %v1973_v48  ;;  %v2030_v45 = vrot.slane %v592_v9, %v1979_v50 }
   0xc   :  { %1650 = vmatprep.subr.mxu1 %v1795_v3  ;;  %v332_v43 = vcombine.low %v310_v41, %v324_v42  ;;  %v333_v46 = vcombine.high %v310_v41, %v324_v42 }
   0xd   :  { %1605 = vmatmul.mubr.msk.f32.vlgmr.msra.gmra.mrb[0].mxu0 %vm41_vm0, %v17_v25  ;;  %v334_v60 = vcombine.low %v317_v52, %v331_v53  ;;  %v335_v17 = vcombine.high %v317_v52, %v331_v53 }
   0xe   :  { %1613 = vmatmul.mubr.msk.f32.vlgmr.msra.gmra.mrb[0].mxu1 %vm41_vm0, %v17_v25  ;;  %136 = vmatprep.mubr.f32.mxu0 %v1795_v3  ;;  %v342_v47 = vrot.slane %v332_v43, %v309_v40  ;;  %v356_v54 = vrot.slane %v333_v46, %v309_v40  ;;  %v2033_v46 = vrot.slane %v592_v9, %v1982_v51 }
   0xf   :  { %249 = vmatprep.mubr.f32.mxu1 %v1795_v3  ;;  %1646 = vmatpush3.msra.mxu0 %v17_v25  ;;  %v2007_v16 = vrot.slane %v334_v60, %v309_v40  ;;  %v2025_v42 = vrot.slane %v335_v17, %v309_v40 }
  0x10   :  { %1651 = vmatpush3.msra.mxu1 %v18_v26  ;;  %1655 = vmatprep.subr.mxu0 %v1795_v3  ;;  %v371_v55 = vrot.slane %v342_v47, %v1973_v48  ;;  %v1985_v56 = vcombine.high %v342_v47, %v342_v47  ;;  %v375_v57 = vrot.slane %v342_v47, %v1976_v49 }
  0x11   :  { %1606 = vmatmul.mubr.msk.f32.gmra.mrb[2].mxu0 %vm41_vm0, %v18_v26  ;;  %1660 = vmatprep.subr.mxu1 %v1795_v3  ;;  %v379_v58 = vrot.slane %v342_v47, %v1979_v50  ;;  %v383_v59 = vrot.slane %v342_v47, %v1982_v51  ;;  %v387_v62 = vrot.slane %v356_v54, %v1973_v48 }
  0x12   :  { %1614 = vmatmul.mubr.msk.f32.gmra.mrb[2].mxu1 %vm41_vm0, %v18_v26  ;;  %142 = vmatprep.mubr.f32.mxu0 %v1795_v3  ;;  %v391_v63 = vrot.slane %v356_v54, %v1976_v49  ;;  %v395_v0 = vrot.slane %v356_v54, %v1979_v50  ;;  %v1993_v1 = vcombine.high %v356_v54, %v356_v54 }
  0x13   :  { %255 = vmatprep.mubr.f32.mxu1 %v1795_v3  ;;  %v399_v6 = vrot.slane %v356_v54, %v1982_v51  ;;  %v403_v7 = vrot.slane %v1985_v56, %v1973_v48  ;;  %v407_v8 = vrot.slane %v1985_v56, %v1976_v49  ;;  %v411_v13 = vrot.slane %v1985_v56, %v1979_v50 }
  0x14   :  { %v415_v14 = vrot.slane %v1985_v56, %v1982_v51  ;;  %v419_v19 = vrot.slane %v1993_v1, %v1973_v48  ;;  %v423_v20 = vrot.slane %v1993_v1, %v1976_v49  ;;  %v427_v25 = vrot.slane %v1993_v1, %v1979_v50 }
  0x15   :  { %1607 = vmatmul.mubr.msk.f32.gmra.mrb[4].mxu0 %vm41_vm0, %v1894_v27  ;;  %v2019_v26 = vrot.slane %v592_v9, %v1976_v49  ;;  %v431_v38 = vrot.slane %v1993_v1, %v1982_v51  ;;  %v435_v41 = vrot.slane %v2007_v16, %v1973_v48  ;;  %v439_v44 = vrot.slane %v2007_v16, %v1976_v49 }
  0x16   :  { %1615 = vmatmul.mubr.msk.f32.gmra.mrb[4].mxu1 %vm41_vm0, %v1894_v27  ;;  %148 = vmatprep.mubr.f32.mxu0 %v1795_v3  ;;  %v443_v54 = vrot.slane %v2007_v16, %v1979_v50  ;;  %v2039_v40 = vcombine.high %v2007_v16, %v2007_v16  ;;  %v451_v60 = vrot.slane %v2025_v42, %v1973_v48 }
  0x17   :  { %261 = vmatprep.mubr.f32.mxu1 %v1795_v3  ;;  %v2053_v1 = vcombine.high %v2025_v42, %v2025_v42 }
  0x18   :  { %v475_v17 = vrot.slane %v2039_v40, %v1979_v50 }
  0x19   :  { %1608 = vmatmul.mubr.msk.f32.gmra.mrb[6].mxu0 %vm41_vm0, %v1905_v28 }
  0x1a   :  { %1616 = vmatmul.mubr.msk.f32.gmra.mrb[6].mxu1 %vm41_vm0, %v1905_v28  ;;  %154 = vmatprep.mubr.f32.mxu0 %v1795_v3 }
  0x1b   :  { %267 = vmatprep.mubr.f32.mxu1 %v1795_v3 }
  0x1d   :  { %1609 = vmatmul.mubr.msk.f32.gmra.mrb[8].mxu0 %vm41_vm0, %v1916_v29 }
  0x1e   :  { %1617 = vmatmul.mubr.msk.f32.gmra.mrb[8].mxu1 %vm41_vm0, %v1916_v29  ;;  %160 = vmatprep.mubr.f32.mxu0 %v1795_v3 }
  0x1f   :  { %273 = vmatprep.mubr.f32.mxu1 %v1795_v3 }
  0x21   :  { %1610 = vmatmul.mubr.msk.f32.gmra.mrb[10].mxu0 %vm41_vm0, %v1927_v30 }
  0x22   :  { %1618 = vmatmul.mubr.msk.f32.gmra.mrb[10].mxu1 %vm41_vm0, %v1927_v30  ;;  %166 = vmatprep.mubr.f32.mxu0 %v1795_v3 }
  0x23   :  { %279 = vmatprep.mubr.f32.mxu1 %v1795_v3 }
  0x25   :  { %1611 = vmatmul.mubr.msk.f32.gmra.mrb[12].mxu0 %vm41_vm0, %v1938_v31 }
  0x26   :  { %1619 = vmatmul.mubr.msk.f32.gmra.mrb[12].mxu1 %vm41_vm0, %v1938_v31  ;;  %172 = vmatprep.mubr.f32.mxu0 %v1795_v3 }
  0x27   :  { %285 = vmatprep.mubr.f32.mxu1 %v1795_v3 }
  0x29   :  { %1612 = vmatmul.mubr.msk.f32.gmra.mrb[14].mxu0 %vm41_vm0, %v1949_v32 }
  0x2a   :  { %1620 = vmatmul.mubr.msk.f32.gmra.mrb[14].mxu1 %vm41_vm0, %v1949_v32  ;;  %1647 = vmatprep.mubr.msk.f32.mxu0 %vm1798_vm9, %v1795_v3 }
  0x2b   :  { %1652 = vmatprep.mubr.msk.f32.mxu1 %vm1798_vm9, %v1795_v3 }
  0xe0   :  { %v132_v61 = vpop.f32.mrb[0].mxu0 }
  0xe1   :  { %v528_v2 = vadd.f32 %v371_v55, %v132_v61  ;;  %v134_v4 = vpop.f32.mrb[1].mxu0  ;;  %v245_v5 = vpop.f32.mrb[0].mxu1  ;;  %v455_v61 = vrot.slane %v2025_v42, %v1976_v49 }
  0xe2   :  { %v529_v10 = vadd.f32 %v375_v57, %v134_v4  ;;  %v530_v11 = vadd.f32 %v379_v58, %v245_v5  ;;  %v247_v12 = vpop.f32.mrb[1].mxu1  ;;  %v447_v58 = vrot.slane %v2007_v16, %v1982_v51 }
  0xe3   :  { %1713 = vtanh.f32 %v528_v2  ;;  %v531_v15 = vadd.f32 %v383_v59, %v247_v12 }
  0xe4   :  { %1715 = vtanh.f32 %v529_v10  ;;  %v138_v18 = vpop.f32.mrb[2].mxu0 }
  0xe5   :  { %1717 = vtanh.f32 %v530_v11  ;;  %v532_v22 = vadd.f32 %v387_v62, %v138_v18  ;;  %v140_v23 = vpop.f32.mrb[3].mxu0  ;;  %v251_v24 = vpop.f32.mrb[2].mxu1 }
  0xe6   :  { %1719 = vtanh.f32 %v531_v15  ;;  %v533_v33 = vadd.f32 %v391_v63, %v140_v23  ;;  %v534_v34 = vadd.f32 %v395_v0, %v251_v24  ;;  %v253_v36 = vpop.f32.mrb[3].mxu1  ;;  %v459_v63 = vrot.slane %v2025_v42, %v1979_v50 }
  0xe7   :  { %1721 = vtanh.f32 %v532_v22  ;;  %v535_v39 = vadd.f32 %v399_v6, %v253_v36  ;;  %v463_v0 = vrot.slane %v2025_v42, %v1982_v51  ;;  %v483_v23 = vrot.slane %v2053_v1, %v1973_v48 }
  0xe8   :  { %1723 = vtanh.f32 %v533_v33  ;;  %v144_v43 = vpop.f32.mrb[4].mxu0 }
  0xe9   :  { %1725 = vtanh.f32 %v534_v34  ;;  %v536_v47 = vadd.f32 %v403_v7, %v144_v43  ;;  %v146_v52 = vpop.f32.mrb[5].mxu0  ;;  %v257_v53 = vpop.f32.mrb[4].mxu1  ;;  %v467_v7 = vrot.slane %v2039_v40, %v1973_v48 }
  0xea   :  { %1727 = vtanh.f32 %v535_v39  ;;  %v537_v55 = vadd.f32 %v407_v8, %v146_v52  ;;  %v538_v56 = vadd.f32 %v411_v13, %v257_v53  ;;  %v259_v57 = vpop.f32.mrb[5].mxu1  ;;  %v471_v8 = vrot.slane %v2039_v40, %v1976_v49 }
  0xeb   :  { %1729 = vtanh.f32 %v536_v47  ;;  %v539_v59 = vadd.f32 %v415_v14, %v259_v57 }
  0xec   :  { %1731 = vtanh.f32 %v537_v55  ;;  %v150_v62 = vpop.f32.mrb[6].mxu0 }
  0xed   :  { %v1714_v2 = vpop.eup %1713  ;;  %1733 = vtanh.f32 %v538_v56  ;;  %v540_v4 = vadd.f32 %v419_v19, %v150_v62  ;;  %v152_v5 = vpop.f32.mrb[7].mxu0 }
  0xee   :  { %v263_v6 = vpop.f32.mrb[6].mxu1  ;;  %v1716_v9 = vpop.eup %1715  ;;  %1735 = vtanh.f32 %v539_v59  ;;  %v541_v10 = vadd.f32 %v423_v20, %v152_v5  ;;  %v614_v13 = vmul.f32 %v1714_v2, %v2014_v21  ;;  %v479_v20 = vrot.slane %v2039_v40, %v1982_v51 }
  0xef   :  { %v542_v11 = vadd.f32 %v427_v25, %v263_v6  ;;  %v265_v12 = vpop.f32.mrb[7].mxu1  ;;  %v1718_v14 = vpop.eup %1717  ;;  %1737 = vtanh.f32 %v540_v4  ;;  %v615_v16 = vmul.f32 %v1716_v9, %v2019_v26  ;;  %v487_v4 = vrot.slane %v2053_v1, %v1976_v49 }
  0xf0   :  { %v543_v15 = vadd.f32 %v431_v38, %v265_v12  ;;  %v1720_v18 = vpop.eup %1719  ;;  %1739 = vtanh.f32 %v541_v10  ;;  %v156_v19 = vpop.f32.mrb[8].mxu0  ;;  %v616_v22 = vmul.f32 %v1718_v14, %v2030_v45  ;;  %v495_v10 = vrot.slane %v2053_v1, %v1982_v51 }
  0xf1   :  { %v1722_v24 = vpop.eup %1721  ;;  %1741 = vtanh.f32 %v542_v11  ;;  %v544_v25 = vadd.f32 %v435_v41, %v156_v19  ;;  %v158_v33 = vpop.f32.mrb[9].mxu0  ;;  %v617_v36 = vmul.f32 %v1720_v18, %v2033_v46  ;;  %v646_v38 = vadd.f32 %v615_v16, %v614_v13 }
  0xf2   :  { %v269_v34 = vpop.f32.mrb[8].mxu1  ;;  %v1724_v39 = vpop.eup %1723  ;;  %1743 = vtanh.f32 %v543_v15  ;;  %v545_v43 = vadd.f32 %v439_v44, %v158_v33  ;;  %v618_v53 = vmul.f32 %v1722_v24, %v2014_v21  ;;  %v491_v44 = vrot.slane %v2053_v1, %v1979_v50 }
  0xf3   :  { %v546_v47 = vadd.f32 %v443_v54, %v269_v34  ;;  %v271_v52 = vpop.f32.mrb[9].mxu1  ;;  %v1726_v55 = vpop.eup %1725  ;;  %1745 = vtanh.f32 %v544_v25  ;;  %v647_v57 = vadd.f32 %v646_v38, %v616_v22  ;;  %v619_v59 = vmul.f32 %v1724_v39, %v2019_v26 }
  0xf4   :  { %v547_v56 = vadd.f32 %v447_v58, %v271_v52  ;;  %v1728_v62 = vpop.eup %1727  ;;  %1747 = vtanh.f32 %v545_v43  ;;  %v162_v41 = vpop.f32.mrb[10].mxu0  ;;  %v620_v2 = vmul.f32 %v1726_v55, %v2030_v45 }
  0xf5   :  { %v1730_v54 = vpop.eup %1729  ;;  %1749 = vtanh.f32 %v546_v47  ;;  %v548_v5 = vadd.f32 %v451_v60, %v162_v41  ;;  %v164_v6 = vpop.f32.mrb[11].mxu0  ;;  %v648_v58 = vadd.f32 %v647_v57, %v617_v36  ;;  %v651_v15 = vadd.f32 %v619_v59, %v618_v53 }
  0xf6   :  { %v275_v9 = vpop.f32.mrb[10].mxu1  ;;  %v1732_v11 = vpop.eup %1731  ;;  %1751 = vtanh.f32 %v547_v56  ;;  %v549_v12 = vadd.f32 %v455_v61, %v164_v6  ;;  %v622_v18 = vmul.f32 %v1730_v54, %v2014_v21  ;;  %v621_v25 = vmul.f32 %v1728_v62, %v2033_v46 }
  0xf7   :  { %v550_v13 = vadd.f32 %v459_v63, %v275_v9  ;;  %v277_v14 = vpop.f32.mrb[11].mxu1  ;;  %v1734_v16 = vpop.eup %1733  ;;  %1753 = vtanh.f32 %v548_v5  ;;  %649 = vadd.xlane.f32.xlu0 %v648_v58  ;;  %v623_v19 = vmul.f32 %v1732_v11, %v2019_v26  ;;  %v652_v61 = vadd.f32 %v651_v15, %v620_v2 }
  0xf8   :  { %v551_v60 = vadd.f32 %v463_v0, %v277_v14  ;;  %v1736_v22 = vpop.eup %1735  ;;  %1755 = vtanh.f32 %v549_v12  ;;  %v168_v24 = vpop.f32.mrb[12].mxu0  ;;  %v624_v63 = vmul.f32 %v1734_v16, %v2030_v45 }
  0xf9   :  { %v1738_v33 = vpop.eup %1737  ;;  %1757 = vtanh.f32 %v550_v13  ;;  %v552_v42 = vadd.f32 %v467_v7, %v168_v24  ;;  %v170_v0 = vpop.f32.mrb[13].mxu0  ;;  %v625_v36 = vmul.f32 %v1736_v22, %v2033_v46  ;;  %v656_v38 = vadd.f32 %v623_v19, %v622_v18 }
  0xfa   :  { %v281_v34 = vpop.f32.mrb[12].mxu1  ;;  %v1740_v39 = vpop.eup %1739  ;;  %1759 = vtanh.f32 %v551_v60  ;;  %v553_v43 = vadd.f32 %v471_v8, %v170_v0  ;;  %v653_v53 = vadd.f32 %v652_v61, %v621_v25  ;;  %v626_v57 = vmul.f32 %v1738_v33, %v2014_v21 }
  0xfb   :  { %v554_v47 = vadd.f32 %v475_v17, %v281_v34  ;;  %v283_v52 = vpop.f32.mrb[13].mxu1  ;;  %v1742_v55 = vpop.eup %1741  ;;  %1761 = vtanh.f32 %v552_v42  ;;  %v657_v56 = vadd.f32 %v656_v38, %v624_v63  ;;  %v627_v8 = vmul.f32 %v1740_v39, %v2019_v26 }
  0xfc   :  { %v555_v7 = vadd.f32 %v479_v20, %v283_v52  ;;  %v1744_v59 = vpop.eup %1743  ;;  %1763 = vtanh.f32 %v553_v43  ;;  %654 = vadd.xlane.f32.xlu0 %v653_v53  ;;  %v174_v62 = vpop.f32.mrb[14].mxu0  ;;  %v628_v41 = vmul.f32 %v1742_v55, %v2030_v45 }
  0xfd   :  { %v1746_v17 = vpop.eup %1745  ;;  %1765 = vtanh.f32 %v554_v47  ;;  %v556_v2 = vadd.f32 %v483_v23, %v174_v62  ;;  %v176_v54 = vpop.f32.mrb[15].mxu0  ;;  %v658_v20 = vadd.f32 %v657_v56, %v625_v36  ;;  %v661_v11 = vadd.f32 %v627_v8, %v626_v57 }
  0xfe   :  { %v287_v40 = vpop.f32.mrb[14].mxu1  ;;  %v1748_v5 = vpop.eup %1747  ;;  %1767 = vtanh.f32 %v555_v7  ;;  %v557_v6 = vadd.f32 %v487_v4, %v176_v54  ;;  %v630_v14 = vmul.f32 %v1746_v17, %v2014_v21  ;;  %v629_v1 = vmul.f32 %v1744_v59, %v2033_v46 }
  0xff   :  { %v558_v9 = vadd.f32 %v491_v44, %v287_v40  ;;  %v289_v58 = vpop.f32.mrb[15].mxu1  ;;  %v1750_v12 = vpop.eup %1749  ;;  %1769 = vtanh.f32 %v556_v2  ;;  %659 = vadd.xlane.f32.xlu1 %v658_v20  ;;  %v631_v15 = vmul.f32 %v1748_v5, %v2019_v26  ;;  %v662_v23 = vadd.f32 %v661_v11, %v628_v41 }
 0x100   :  { %v559_v13 = vadd.f32 %v495_v10, %v289_v58  ;;  %v1752_v16 = vpop.eup %1751  ;;  %1771 = vtanh.f32 %v557_v6  ;;  %v632_v60 = vmul.f32 %v1750_v12, %v2030_v45  ;;  %v695_v12 = vand.u32 127, %v307_v35 }
 0x101   :  { %v1754_v18 = vpop.eup %1753  ;;  %1773 = vtanh.f32 %v558_v9  ;;  %v666_v4 = vadd.f32 %v631_v15, %v630_v14  ;;  %v663_v19 = vadd.f32 %v662_v23, %v629_v1  ;;  %v633_v24 = vmul.f32 %v1752_v16, %v2033_v46 }
 0x102   :  { %v1756_v44 = vpop.eup %1755  ;;  %1775 = vtanh.f32 %v559_v13  ;;  %v634_v10 = vmul.f32 %v1754_v18, %v2014_v21  ;;  %v2126_v15 = vsub.s32 %v695_v12, %v1957_v37 }
 0x103   :  { %v1758_v22 = vpop.eup %1757  ;;  %v667_v25 = vadd.f32 %v666_v4, %v632_v60  ;;  %v635_v61 = vmul.f32 %v1756_v44, %v2019_v26  ;;  %664 = vadd.xlane.f32.xlu1 %v663_v19 }
 0x104   :  { %v1760_v63 = vpop.eup %1759  ;;  %v636_v33 = vmul.f32 %v1758_v22, %v2030_v45 }
 0x105   :  { %v1762_v42 = vpop.eup %1761  ;;  %v668_v0 = vadd.f32 %v667_v25, %v633_v24  ;;  %v671_v34 = vadd.f32 %v635_v61, %v634_v10  ;;  %v637_v43 = vmul.f32 %v1760_v63, %v2033_v46 }
 0x106   :  { %v1764_v36 = vpop.eup %1763  ;;  %v638_v38 = vmul.f32 %v1762_v42, %v2014_v21 }
 0x107   :  { %v1766_v39 = vpop.eup %1765  ;;  %669 = vadd.xlane.f32.xlu0 %v668_v0  ;;  %v672_v47 = vadd.f32 %v671_v34, %v636_v33  ;;  %v639_v52 = vmul.f32 %v1764_v36, %v2019_v26  ;;  %v1797_v0 = vmov 0  }
 0x108   :  { %v1768_v53 = vpop.eup %1767  ;;  %v640_v55 = vmul.f32 %v1766_v39, %v2030_v45  ;;  %1706 = vset.pattern.permute.xlu0 %v1797_v0  ;;  %1705 = vset.pattern.permute.xlu1 %v1797_v0 }
 0x109   :  { %v1770_v7 = vpop.eup %1769  ;;  %v673_v56 = vadd.f32 %v672_v47, %v637_v43  ;;  %v676_v57 = vadd.f32 %v639_v52, %v638_v38  ;;  %v641_v41 = vmul.f32 %v1768_v53, %v2033_v46  ;;  %v766_v43 = vsub.s32 4, %v1957_v37 }
 0x10a   :  { %v1772_v59 = vpop.eup %1771  ;;  %v642_v62 = vmul.f32 %v1770_v7, %v2014_v21 }
 0x10b   :  { %v1774_v8 = vpop.eup %1773  ;;  %674 = vadd.xlane.f32.xlu1 %v673_v56  ;;  %v677_v17 = vadd.f32 %v676_v57, %v640_v55  ;;  %v643_v2 = vmul.f32 %v1772_v59, %v2019_v26  ;;  %v770_v57 = vsub.s32 5, %v1957_v37 }
 0x10c   :  { %v1776_v54 = vpop.eup %1775  ;;  %v644_v40 = vmul.f32 %v1774_v8, %v2030_v45 }
 0x10d   :  { %v678_v20 = vadd.f32 %v677_v17, %v641_v41  ;;  %v681_v5 = vadd.f32 %v643_v2, %v642_v62  ;;  %v645_v6 = vmul.f32 %v1776_v54, %v2033_v46  ;;  %v774_v41 = vsub.s32 6, %v1957_v37 }
 0x10f   :  { %679 = vadd.xlane.f32.xlu0 %v678_v20  ;;  %v682_v9 = vadd.f32 %v681_v5, %v644_v40  ;;  %v778_v40 = vsub.s32 7, %v1957_v37 }
 0x111   :  { %v683_v58 = vadd.f32 %v682_v9, %v645_v6 }
 0x113   :  { %684 = vadd.xlane.f32.xlu1 %v683_v58 }
 0x184   :  { %v650_v11 = vpop.xlane.xlu0 %649 }
 0x185   :  { %v699_v46 = vrot.slane %v650_v11, %v2126_v15 }
 0x189   :  { %v655_v13 = vpop.xlane.xlu0 %654 }
 0x18a   :  { %v703_v45 = vrot.slane %v655_v13, %v2126_v15 }
 0x18c   :  { %v660_v21 = vpop.xlane.xlu1 %659  ;;  %v729_v18 = vsel %vm728_vm1, %v703_v45, %v699_v46 }
 0x18d   :  { %v707_v16 = vrot.slane %v660_v21, %v2126_v15 }
 0x18f   :  { %v731_v44 = vsel %vm730_vm2, %v707_v16, %v729_v18 }
 0x190   :  { %v665_v14 = vpop.xlane.xlu1 %664 }
 0x191   :  { %v711_v23 = vrot.slane %v665_v14, %v2126_v15 }
 0x193   :  { %v733_v10 = vsel %vm732_vm3, %v711_v23, %v731_v44 }
 0x194   :  { %v670_v26 = vpop.xlane.xlu0 %669 }
 0x195   :  { %v715_v35 = vrot.slane %v670_v26, %v2126_v15 }
 0x197   :  { %v735_v22 = vsel %vm734_vm4, %v715_v35, %v733_v10 }
 0x198   :  { %v675_v1 = vpop.xlane.xlu1 %674 }
 0x199   :  { %v719_v4 = vrot.slane %v675_v1, %v2126_v15 }
 0x19b   :  { %v737_v61 = vsel %vm736_vm5, %v719_v4, %v735_v22 }
 0x19c   :  { %v680_v60 = vpop.xlane.xlu0 %679 }
 0x19d   :  { %v723_v19 = vrot.slane %v680_v60, %v2126_v15 }
 0x19f   :  { %v739_v63 = vsel %vm738_vm6, %v723_v19, %v737_v61 }
 0x1a0   :  { %v685_v24 = vpop.xlane.xlu1 %684 }
 0x1a1   :  { %v727_v25 = vrot.slane %v685_v24, %v2126_v15 }
 0x1a3   :  { %v741_v33 = vsel %vm740_vm7, %v727_v25, %v739_v63 }
 0x1a4   :  { %v744_v42 = vsel %vm743_vm8, %v741_v33, -inf }
 0x1a5   :  { %745 = vmax.xlane.f32.xlu0 %v744_v42 }
 0x232   :  { %v746_v34 = vpop.xlane.xlu0 %745 }
 0x233   :  { %v751_v36 = vrot.slane %v746_v34, %v1973_v48  ;;  %v755_v38 = vrot.slane %v746_v34, %v1976_v49  ;;  %v759_v39 = vrot.slane %v746_v34, %v1979_v50  ;;  %v763_v47 = vrot.slane %v746_v34, %v1982_v51 }
 0x234   :  { %v767_v59 = vrot.slane %v746_v34, %v766_v43  ;;  %v771_v17 = vrot.slane %v746_v34, %v770_v57  ;;  %v775_v20 = vrot.slane %v746_v34, %v774_v41 }
 0x235   :  { %v788_v52 = vsub.f32 %v650_v11, %v751_v36  ;;  %v789_v53 = vsub.f32 %v655_v13, %v755_v38  ;;  %v790_v55 = vsub.f32 %v660_v21, %v759_v39  ;;  %v791_v62 = vsub.f32 %v665_v14, %v763_v47 }
 0x236   :  { %v792_v2 = vsub.f32 %v670_v26, %v767_v59  ;;  %v793_v5 = vsub.f32 %v675_v1, %v771_v17  ;;  %v779_v11 = vrot.slane %v746_v34, %v778_v40  ;;  %v794_v21 = vsub.f32 %v680_v60, %v775_v20 }
 0x237   :  { %v796_v7 = vmul.f32 1.442695, %v788_v52  ;;  %v798_v56 = vmul.f32 1.442695, %v789_v53  ;;  %v800_v8 = vmul.f32 1.442695, %v790_v55 }
 0x238   :  { %v802_v54 = vmul.f32 1.442695, %v791_v62  ;;  %v804_v6 = vmul.f32 1.442695, %v792_v2  ;;  %v806_v12 = vmul.f32 1.442695, %v793_v5  ;;  %v795_v14 = vsub.f32 %v685_v24, %v779_v11 }
 0x239   :  { %1777 = vpow2.f32 %v796_v7  ;;  %v808_v26 = vmul.f32 1.442695, %v794_v21 }
 0x23a   :  { %1779 = vpow2.f32 %v798_v56  ;;  %v810_v16 = vmul.f32 1.442695, %v795_v14 }
 0x23b   :  { %1781 = vpow2.f32 %v800_v8 }
 0x23c   :  { %1783 = vpow2.f32 %v802_v54 }
 0x23d   :  { %1785 = vpow2.f32 %v804_v6 }
 0x23e   :  { %1787 = vpow2.f32 %v806_v12 }
 0x23f   :  { %1789 = vpow2.f32 %v808_v26 }
 0x240   :  { %1791 = vpow2.f32 %v810_v16 }
 0x243   :  { %v1778_v9 = vpop.eup %1777 }
 0x244   :  { %v1780_v58 = vpop.eup %1779  ;;  %821 = vperm.xlu1 %1705, %v1778_v9  }
 0x245   :  { %824 = vperm.xlu0 %1706, %v1780_v58   ;;  %v1782_v13 = vpop.eup %1781 }
 0x246   :  { %v1784_v45 = vpop.eup %1783 }
 0x247   :  { %v1786_v1 = vpop.eup %1785 }
 0x248   :  { %827 = vperm.xlu1 %1705, %v1782_v13   ;;  %v1788_v46 = vpop.eup %1787 }
 0x249   :  { %v1790_v23 = vpop.eup %1789 }
 0x24a   :  { %v1792_v35 = vpop.eup %1791 }
 0x24c   :  { %830 = vperm.xlu1 %1705, %v1784_v45  }
 0x250   :  { %833 = vperm.xlu1 %1705, %v1786_v1  }
 0x254   :  { %836 = vperm.xlu1 %1705, %v1788_v46  }
 0x258   :  { %839 = vperm.xlu1 %1705, %v1790_v23  }
 0x25c   :  { %842 = vperm.xlu1 %1705, %v1792_v35  }
 0x2c3   :  { %v822_v60 = vpop.permute.xlu1 %821 }
 0x2c4   :  { %v825_v19 = vpop.permute.xlu0 %824  ;;  %v847_v24 = vrot.slane %v822_v60, %v2126_v15 }
 0x2c5   :  { %v851_v22 = vrot.slane %v825_v19, %v2126_v15 }
 0x2c7   :  { %v828_v18 = vpop.permute.xlu1 %827  ;;  %v876_v42 = vsel %vm728_vm1, %v851_v22, %v847_v24 }
 0x2c8   :  { %v855_v25 = vrot.slane %v828_v18, %v2126_v15 }
 0x2ca   :  { %v877_v34 = vsel %vm730_vm2, %v855_v25, %v876_v42 }
 0x2cb   :  { %v831_v4 = vpop.permute.xlu1 %830 }
 0x2cc   :  { %v859_v61 = vrot.slane %v831_v4, %v2126_v15 }
 0x2ce   :  { %v878_v38 = vsel %vm732_vm3, %v859_v61, %v877_v34 }
 0x2cf   :  { %v834_v44 = vpop.permute.xlu1 %833 }
 0x2d0   :  { %v863_v63 = vrot.slane %v834_v44, %v2126_v15 }
 0x2d2   :  { %v879_v39 = vsel %vm734_vm4, %v863_v63, %v878_v38 }
 0x2d3   :  { %v837_v10 = vpop.permute.xlu1 %836 }
 0x2d4   :  { %v867_v0 = vrot.slane %v837_v10, %v2126_v15 }
 0x2d6   :  { %v880_v52 = vsel %vm736_vm5, %v867_v0, %v879_v39 }
 0x2d7   :  { %v840_v33 = vpop.permute.xlu1 %839 }
 0x2d8   :  { %v871_v36 = vrot.slane %v840_v33, %v2126_v15 }
 0x2da   :  { %v881_v55 = vsel %vm738_vm6, %v871_v36, %v880_v52 }
 0x2db   :  { %v843_v47 = vpop.permute.xlu1 %842 }
 0x2dc   :  { %v875_v53 = vrot.slane %v843_v47, %v2126_v15 }
 0x2de   :  { %v882_v7 = vsel %vm740_vm7, %v875_v53, %v881_v55 }
 0x2df   :  { %v884_v56 = vsel %vm743_vm8, %v882_v7, 0.0 }
 0x2e0   :  { %885 = vadd.xlane.f32.xlu1 %v884_v56 }
 0x36d   :  { %v886_v59 = vpop.xlane.xlu1 %885 }
 0x36e   :  { %1793 = vrcp.f32 %v886_v59 }
 0x378   :  { %v1794_v62 = vpop.eup %1793 }
 0x379   :  { %v892_v8 = vrot.slane %v1794_v62, %v1973_v48  ;;  %v896_v2 = vrot.slane %v1794_v62, %v1976_v49  ;;  %v900_v20 = vrot.slane %v1794_v62, %v1979_v50  ;;  %v904_v6 = vrot.slane %v1794_v62, %v1982_v51 }
 0x37a   :  { %v908_v49 = vrot.slane %v1794_v62, %v766_v43  ;;  %v912_v11 = vrot.slane %v1794_v62, %v770_v57  ;;  %v920_v51 = vrot.slane %v1794_v62, %v778_v40 }
 0x37b   :  { %v929_v17 = vmul.f32 %v1778_v9, %v892_v8  ;;  %v930_v54 = vmul.f32 %v1780_v58, %v896_v2  ;;  %v931_v5 = vmul.f32 %v1782_v13, %v900_v20  ;;  %v932_v48 = vmul.f32 %v1784_v45, %v904_v6 }
 0x37c   :  { %v933_v9 = vmul.f32 %v1786_v1, %v908_v49  ;;  %v934_v21 = vmul.f32 %v1788_v46, %v912_v11  ;;  %v916_v58 = vrot.slane %v1794_v62, %v774_v41  ;;  %v936_v12 = vmul.f32 %v1792_v35, %v920_v51 }
 0x37d   :  { %939 = vperm.xlu0 %1706, %v929_v17  }
 0x37e   :  { %v935_v50 = vmul.f32 %v1790_v23, %v916_v58 }
 0x381   :  { %1019 = vperm.xlu0 %1706, %v930_v54  }
 0x385   :  { %1099 = vperm.xlu0 %1706, %v931_v5  }
 0x389   :  { %1179 = vperm.xlu0 %1706, %v932_v48  }
 0x38d   :  { %1259 = vperm.xlu0 %1706, %v933_v9  }
 0x391   :  { %1339 = vperm.xlu0 %1706, %v934_v21  }
 0x395   :  { %1419 = vperm.xlu0 %1706, %v935_v50  }
 0x399   :  { %1499 = vperm.xlu0 %1706, %v936_v12  }
 0x3fc   :  { %v940_v13 = vpop.permute.xlu0 %939 }
 0x3fd   :  { %v944_v43 = vrot.slane %v940_v13, %v2126_v15 }
 0x3ff   :  { %1648 = vmatmul.mubr.msk.f32.vlgmr.msra.gmra.mrb[16].mxu0 %vm743_vm8, %v944_v43 }
 0x400   :  { %v1020_v14 = vpop.permute.xlu0 %1019  ;;  %1656 = vmatpush3.msra.mxu0 %v1894_v27  ;;  %1657 = vmatprep.mubr.msk.f32.mxu0 %vm1798_vm9, %v1795_v3 }
 0x401   :  { %v1024_v57 = vrot.slane %v1020_v14, %v2126_v15  ;;  %1665 = vmatprep.subr.mxu0 %v1795_v3 }
 0x403   :  { %1653 = vmatmul.mubr.msk.f32.vlgmr.msra.gmra.mrb[16].mxu1 %vm743_vm8, %v1024_v57 }
 0x404   :  { %v1100_v37 = vpop.permute.xlu0 %1099  ;;  %1661 = vmatpush3.msra.mxu1 %v1905_v28  ;;  %1662 = vmatprep.mubr.msk.f32.mxu1 %vm1798_vm9, %v1795_v3 }
 0x405   :  { %v1104_v41 = vrot.slane %v1100_v37, %v2126_v15  ;;  %1670 = vmatprep.subr.mxu1 %v1795_v3 }
 0x407   :  { %1658 = vmatmul.mubr.msk.f32.vlgmr.msra.gmra.mrb[18].mxu0 %vm743_vm8, %v1104_v41 }
 0x408   :  { %v1180_v27 = vpop.permute.xlu0 %1179  ;;  %1666 = vmatpush3.msra.mxu0 %v1916_v29  ;;  %1667 = vmatprep.mubr.msk.f32.mxu0 %vm1798_vm9, %v1795_v3 }
 0x409   :  { %v1184_v40 = vrot.slane %v1180_v27, %v2126_v15  ;;  %1675 = vmatprep.subr.mxu0 %v1795_v3 }
 0x40b   :  { %1663 = vmatmul.mubr.msk.f32.vlgmr.msra.gmra.mrb[18].mxu1 %vm743_vm8, %v1184_v40 }
 0x40c   :  { %v1260_v28 = vpop.permute.xlu0 %1259  ;;  %1671 = vmatpush3.msra.mxu1 %v1927_v30  ;;  %1672 = vmatprep.mubr.msk.f32.mxu1 %vm1798_vm9, %v1795_v3 }
 0x40d   :  { %v1264_v26 = vrot.slane %v1260_v28, %v2126_v15  ;;  %1680 = vmatprep.subr.mxu1 %v1795_v3 }
 0x40f   :  { %1668 = vmatmul.mubr.msk.f32.vlgmr.msra.gmra.mrb[20].mxu0 %vm743_vm8, %v1264_v26 }
 0x410   :  { %v1340_v29 = vpop.permute.xlu0 %1339  ;;  %1676 = vmatpush3.msra.mxu0 %v1938_v31  ;;  %1677 = vmatprep.mubr.msk.f32.mxu0 %vm1798_vm9, %v1795_v3 }
 0x411   :  { %v1344_v45 = vrot.slane %v1340_v29, %v2126_v15 }
 0x413   :  { %1673 = vmatmul.mubr.msk.f32.vlgmr.msra.gmra.mrb[20].mxu1 %vm743_vm8, %v1344_v45 }
 0x414   :  { %v1420_v30 = vpop.permute.xlu0 %1419  ;;  %1681 = vmatpush3.msra.mxu1 %v1949_v32  ;;  %1682 = vmatprep.mubr.msk.f32.mxu1 %vm1798_vm9, %v1795_v3 }
 0x415   :  { %v1424_v16 = vrot.slane %v1420_v30, %v2126_v15 }
 0x417   :  { %1678 = vmatmul.mubr.msk.f32.vlgmr.msra.gmra.mrb[22].mxu0 %vm743_vm8, %v1424_v16 }
 0x418   :  { %v1500_v1 = vpop.permute.xlu0 %1499 }
 0x419   :  { %v1504_v31 = vrot.slane %v1500_v1, %v2126_v15 }
 0x41b   :  { %1683 = vmatmul.mubr.msk.f32.vlgmr.msra.gmra.mrb[22].mxu1 %vm743_vm8, %v1504_v31 }
 0x4d2   :  { %v1013_v46 = vpop.f32.mrb[16].mxu0 }
 0x4d3   :  { %v1649_v23 = vpop.f32.mrb[17].mxu0 }
 0x4d6   :  { %v1093_v35 = vpop.f32.mrb[16].mxu1 }
 0x4d7   :  { %v1585_v60 = vrot.slane %v1093_v35, 7  ;;  %v1654_v18 = vpop.f32.mrb[17].mxu1 }
 0x4d9   :  { %v1586_v4 = vsel %vm728_vm1, %v1585_v60, %v1013_v46 }
 0x4da   :  { %v1173_v32 = vpop.f32.mrb[18].mxu0 }
 0x4db   :  { %v1587_v44 = vrot.slane %v1173_v32, 6  ;;  %v1659_v19 = vpop.f32.mrb[19].mxu0 }
 0x4dd   :  { %v1588_v3 = vsel %vm730_vm2, %v1587_v44, %v1586_v4 }
 0x4de   :  { %v1253_v10 = vpop.f32.mrb[18].mxu1 }
 0x4df   :  { %v1589_v22 = vrot.slane %v1253_v10, 5  ;;  %v1664_v24 = vpop.f32.mrb[19].mxu1 }
 0x4e1   :  { %v1590_v25 = vsel %vm732_vm3, %v1589_v22, %v1588_v3 }
 0x4e2   :  { %v1333_v15 = vpop.f32.mrb[20].mxu0 }
 0x4e3   :  { %v1591_v61 = vrot.slane %v1333_v15, 4  ;;  %v1669_v63 = vpop.f32.mrb[21].mxu0 }
 0x4e5   :  { %v1592_v33 = vsel %vm734_vm4, %v1591_v61, %v1590_v25 }
 0x4e6   :  { %v1413_v42 = vpop.f32.mrb[20].mxu1 }
 0x4e7   :  { %v1593_v0 = vrot.slane %v1413_v42, 3  ;;  %v1674_v34 = vpop.f32.mrb[21].mxu1 }
 0x4e9   :  { %v1594_v36 = vsel %vm736_vm5, %v1593_v0, %v1592_v33 }
 0x4ea   :  { %v1493_v38 = vpop.f32.mrb[22].mxu0 }
 0x4eb   :  { %v1595_v39 = vrot.slane %v1493_v38, 2  ;;  %v1679_v47 = vpop.f32.mrb[23].mxu0 }
 0x4ed   :  { %v1596_v52 = vsel %vm738_vm6, %v1595_v39, %v1594_v36 }
 0x4ee   :  { %v1573_v53 = vpop.f32.mrb[22].mxu1 }
 0x4ef   :  { %v1597_v55 = vrot.slane %v1573_v53, 1  ;;  %v1684_v7 = vpop.f32.mrb[23].mxu1 }
 0x4f1   :  { %v1598_v56 = vsel %vm740_vm7, %v1597_v55, %v1596_v52 }
 0x4f2   :  { %1600 = vst.msk [vmem:[%s2245_s4] sm:$0xff] %vm41_vm0, %v1598_v56 }

</bundles_post_ra>
